<compile_context>
chip_gen: v7x
topology: tpu7x:2x2x1
jax: 0.10.0
libtpu: 0.0.40
codegen_flags: <defaults>
</compile_context>

<pallas_src>
import math
import jax
import jax.numpy as jnp
from jax.experimental import pallas as pl
from jax.experimental.pallas import tpu as pltpu

BN_EPS = 1e-5
LANE = 128  # pad the 64-wide output to a full lane width


def _bn_relu(h, gamma, beta):
    """Training-mode BatchNorm1d (batch stats, biased var) + ReLU, one-pass stats."""
    inv_n = 1.0 / h.shape[0]
    s = jnp.sum(h, axis=0, keepdims=True)
    sq = jnp.sum(h * h, axis=0, keepdims=True)
    mean = s * inv_n
    var = sq * inv_n - mean * mean          # biased variance, as in torch's forward
    inv_std = jax.lax.rsqrt(var + BN_EPS)   # EUP path
    return jnp.maximum(gamma * (h - mean) * inv_std + beta, 0.0)


def audio_model_kernel(x_ref, w1_ref, w2_ref, w3p_ref, vecs_ref, o_ref):
    # vecs_ref rows: 0=gamma1, 1=beta1, 2=gamma2, 3=beta2, 4=b3 (lane-padded), 5..7 unused
    x = x_ref[...].astype(jnp.float32)

    # Layer 0: Linear(input -> hidden)  [bias dropped: cancels under batch-stat BN]
    h = jnp.dot(x, w1_ref[...], preferred_element_type=jnp.float32)
    h = _bn_relu(h, vecs_ref[0:1, :], vecs_ref[1:2, :])

    # Hidden layer: Linear(hidden -> hidden) [bias dropped] + BN + ReLU
    h = jnp.dot(h, w2_ref[...], preferred_element_type=jnp.float32)
    h = _bn_relu(h, vecs_ref[2:3, :], vecs_ref[3:4, :])

    # Output layer: Linear(hidden -> output), output padded to 128 lanes
    o_ref[...] = (jnp.dot(h, w3p_ref[...], preferred_element_type=jnp.float32)
                  + vecs_ref[4:5, :])


def audio_model_forward(x, params):
    """Run the fused kernel.  `params` is the PyTorch-shaped tuple from init_params."""
    (w1, b1, g1, be1, w2, b2, g2, be2, w3, b3) = params
    del b1, b2  # exactly cancelled by the batch-stat mean subtraction in BN

    B, in_size = x.shape
    hid = w1.shape[1]
    out_size = w3.shape[1]

    # Pad the final layer to a lane-dense (hid, 128) / (1, 128) shape.
    w3p = jnp.zeros((hid, LANE), jnp.float32).at[:, :out_size].set(w3)
    b3p = jnp.zeros((1, LANE), jnp.float32).at[:, :out_size].set(b3)

    # Pack the small per-layer vectors into one (8, 128) VMEM-friendly block.
    vecs = jnp.zeros((8, LANE), jnp.float32)
    vecs = vecs.at[0, :hid].set(g1[0])
    vecs = vecs.at[1, :hid].set(be1[0])
    vecs = vecs.at[2, :hid].set(g2[0])
    vecs = vecs.at[3, :hid].set(be2[0])
    vecs = vecs.at[4, :].set(b3p[0])

    vmem = pl.BlockSpec(memory_space=pltpu.MemorySpace.VMEM)  # whole array in VMEM

    flops = 2 * B * (in_size * hid + hid * hid + hid * LANE)
    bytes_accessed = 4 * (x.size + w1.size + w2.size + w3p.size + vecs.size + B * LANE)

    out_padded = pl.pallas_call(
        audio_model_kernel,
        out_shape=jax.ShapeDtypeStruct((B, LANE), jnp.float32),
        in_specs=[vmem, vmem, vmem, vmem, vmem],
        out_specs=vmem,
        cost_estimate=pl.CostEstimate(flops=flops,
                                      transcendentals=2 * hid,
                                      bytes_accessed=bytes_accessed),
    )(x.astype(jnp.float32), w1, w2, w3p, vecs)

    return out_padded[:, :out_size]


def init_params(key, input_size=40, hidden_size=128, output_size=64):
    """Deterministic init matching the PyTorch module's shapes.

    Linear weights: Xavier-uniform (config['USE_XAVIER_INIT'] assumed True),
    stored transposed as (in_features, out_features).
    Linear biases: U(-1/sqrt(fan_in), 1/sqrt(fan_in)) (PyTorch default).
    BatchNorm: gamma = 1, beta = 0.
    """
    def xavier(k, fan_in, fan_out):
        limit = math.sqrt(6.0 / (fan_in + fan_out))
        return jax.random.uniform(k, (fan_in, fan_out), jnp.float32, -limit, limit)

    def lin_bias(k, fan_in, fan_out):
        bound = 1.0 / math.sqrt(fan_in)
        return jax.random.uniform(k, (1, fan_out), jnp.float32, -bound, bound)

    ks = jax.random.split(key, 6)
    w1 = xavier(ks[0], input_size, hidden_size)
    b1 = lin_bias(ks[1], input_size, hidden_size)
    g1 = jnp.ones((1, hidden_size), jnp.float32)
    be1 = jnp.zeros((1, hidden_size), jnp.float32)

    w2 = xavier(ks[2], hidden_size, hidden_size)
    b2 = lin_bias(ks[3], hidden_size, hidden_size)
    g2 = jnp.ones((1, hidden_size), jnp.float32)
    be2 = jnp.zeros((1, hidden_size), jnp.float32)

    w3 = xavier(ks[4], hidden_size, output_size)
    b3 = lin_bias(ks[5], hidden_size, output_size)

    return (w1, b1, g1, be1, w2, b2, g2, be2, w3, b3)


def reference_forward(x, params):
    """Pure-JAX reference mirroring the PyTorch module (biases included)."""
    (w1, b1, g1, be1, w2, b2, g2, be2, w3, b3) = params

    def bn_relu(h, g, be):
        mean = jnp.mean(h, axis=0, keepdims=True)
        var = jnp.mean((h - mean) ** 2, axis=0, keepdims=True)
        return jnp.maximum(g * (h - mean) / jnp.sqrt(var + BN_EPS) + be, 0.0)

    h = bn_relu(x @ w1 + b1, g1, be1)
    h = bn_relu(h @ w2 + b2, g2, be2)
    return h @ w3 + b3


if __name__ == "__main__":
    key = jax.random.PRNGKey(0)
    k_x, k_p = jax.random.split(key)

    B, IN, HID, OUT = 8, 40, 128, 64
    x = jax.random.normal(k_x, (B, IN), jnp.float32)
    params = init_params(k_p, IN, HID, OUT)

    out = audio_model_forward(x, params)
    out = jax.block_until_ready(out)

    ref = reference_forward(x, params)
    assert out.shape == (B, OUT)
    assert jnp.allclose(out, ref, atol=1e-4, rtol=1e-4)

    print("KERNEL_OK")
</pallas_src>

<mosaic_0001>
module attributes {stable_mosaic.version = 11 : i64} {
  func.func @audio_model_kernel(%arg0: memref<8x40xf32, #tpu.memory_space<vmem>>, %arg1: memref<40x128xf32, #tpu.memory_space<vmem>>, %arg2: memref<128x128xf32, #tpu.memory_space<vmem>>, %arg3: memref<128x128xf32, #tpu.memory_space<vmem>>, %arg4: memref<8x128xf32, #tpu.memory_space<vmem>>, %arg5: memref<8x128xf32, #tpu.memory_space<vmem>>) attributes {dimension_semantics = [], scalar_prefetch = 0 : i64, scratch_operands = 0 : i64, tpu.core_type = #tpu.core_type<tc>} {
    %c0 = arith.constant 0 : index
    %c0_0 = arith.constant 0 : index
    %0 = vector.load %arg0[%c0, %c0_0] : memref<8x40xf32, #tpu.memory_space<vmem>>, vector<8x40xf32>
    %c0_1 = arith.constant 0 : index
    %c0_2 = arith.constant 0 : index
    %1 = vector.load %arg1[%c0_1, %c0_2] : memref<40x128xf32, #tpu.memory_space<vmem>>, vector<40x128xf32>
    %cst = arith.constant dense<0.000000e+00> : vector<8x128xf32>
    %2 = tpu.matmul %0, %1, %cst {dimension_numbers = #tpu.dot_dimension_numbers<[1], [0], [0], [1], [0, 0, 1, 1], [], []>} : vector<8x40xf32>, vector<40x128xf32>, vector<8x128xf32> -> vector<8x128xf32>
    %c0_3 = arith.constant 0 : index
    %c0_4 = arith.constant 0 : index
    %3 = vector.load %arg4[%c0_3, %c0_4] : memref<8x128xf32, #tpu.memory_space<vmem>>, vector<1x128xf32>
    %c1 = arith.constant 1 : index
    %c0_5 = arith.constant 0 : index
    %4 = vector.load %arg4[%c1, %c0_5] : memref<8x128xf32, #tpu.memory_space<vmem>>, vector<1x128xf32>
    %cst_6 = arith.constant dense<0.000000e+00> : vector<128xf32>
    %5 = vector.multi_reduction <add>, %2, %cst_6 [0] : vector<8x128xf32> to vector<128xf32>
    %6 = vector.shape_cast %5 : vector<128xf32> to vector<1x128xf32>
    %7 = arith.mulf %2, %2 : vector<8x128xf32>
    %cst_7 = arith.constant dense<0.000000e+00> : vector<128xf32>
    %8 = vector.multi_reduction <add>, %7, %cst_7 [0] : vector<8x128xf32> to vector<128xf32>
    %9 = vector.shape_cast %8 : vector<128xf32> to vector<1x128xf32>
    %cst_8 = arith.constant 1.250000e-01 : f32
    %10 = vector.broadcast %cst_8 : f32 to vector<1x128xf32>
    %11 = arith.mulf %6, %10 : vector<1x128xf32>
    %cst_9 = arith.constant 1.250000e-01 : f32
    %12 = vector.broadcast %cst_9 : f32 to vector<1x128xf32>
    %13 = arith.mulf %9, %12 : vector<1x128xf32>
    %14 = arith.mulf %11, %11 : vector<1x128xf32>
    %15 = arith.subf %13, %14 : vector<1x128xf32>
    %cst_10 = arith.constant 9.99999974E-6 : f32
    %16 = vector.broadcast %cst_10 : f32 to vector<1x128xf32>
    %17 = arith.addf %15, %16 : vector<1x128xf32>
    %18 = math.rsqrt %17 : vector<1x128xf32>
    %19 = vector.broadcast %11 : vector<1x128xf32> to vector<8x128xf32>
    %20 = arith.subf %2, %19 : vector<8x128xf32>
    %21 = vector.broadcast %3 : vector<1x128xf32> to vector<8x128xf32>
    %22 = arith.mulf %21, %20 : vector<8x128xf32>
    %23 = vector.broadcast %18 : vector<1x128xf32> to vector<8x128xf32>
    %24 = arith.mulf %22, %23 : vector<8x128xf32>
    %25 = vector.broadcast %4 : vector<1x128xf32> to vector<8x128xf32>
    %26 = arith.addf %24, %25 : vector<8x128xf32>
    %cst_11 = arith.constant 0.000000e+00 : f32
    %27 = vector.broadcast %cst_11 : f32 to vector<8x128xf32>
    %28 = arith.maximumf %26, %27 : vector<8x128xf32>
    %c0_12 = arith.constant 0 : index
    %c0_13 = arith.constant 0 : index
    %29 = vector.load %arg2[%c0_12, %c0_13] : memref<128x128xf32, #tpu.memory_space<vmem>>, vector<128x128xf32>
    %cst_14 = arith.constant dense<0.000000e+00> : vector<8x128xf32>
    %30 = tpu.matmul %28, %29, %cst_14 {dimension_numbers = #tpu.dot_dimension_numbers<[1], [0], [0], [1], [0, 0, 1, 1], [], []>} : vector<8x128xf32>, vector<128x128xf32>, vector<8x128xf32> -> vector<8x128xf32>
    %c2 = arith.constant 2 : index
    %c0_15 = arith.constant 0 : index
    %31 = vector.load %arg4[%c2, %c0_15] : memref<8x128xf32, #tpu.memory_space<vmem>>, vector<1x128xf32>
    %c3 = arith.constant 3 : index
    %c0_16 = arith.constant 0 : index
    %32 = vector.load %arg4[%c3, %c0_16] : memref<8x128xf32, #tpu.memory_space<vmem>>, vector<1x128xf32>
    %cst_17 = arith.constant dense<0.000000e+00> : vector<128xf32>
    %33 = vector.multi_reduction <add>, %30, %cst_17 [0] : vector<8x128xf32> to vector<128xf32>
    %34 = vector.shape_cast %33 : vector<128xf32> to vector<1x128xf32>
    %35 = arith.mulf %30, %30 : vector<8x128xf32>
    %cst_18 = arith.constant dense<0.000000e+00> : vector<128xf32>
    %36 = vector.multi_reduction <add>, %35, %cst_18 [0] : vector<8x128xf32> to vector<128xf32>
    %37 = vector.shape_cast %36 : vector<128xf32> to vector<1x128xf32>
    %cst_19 = arith.constant 1.250000e-01 : f32
    %38 = vector.broadcast %cst_19 : f32 to vector<1x128xf32>
    %39 = arith.mulf %34, %38 : vector<1x128xf32>
    %cst_20 = arith.constant 1.250000e-01 : f32
    %40 = vector.broadcast %cst_20 : f32 to vector<1x128xf32>
    %41 = arith.mulf %37, %40 : vector<1x128xf32>
    %42 = arith.mulf %39, %39 : vector<1x128xf32>
    %43 = arith.subf %41, %42 : vector<1x128xf32>
    %cst_21 = arith.constant 9.99999974E-6 : f32
    %44 = vector.broadcast %cst_21 : f32 to vector<1x128xf32>
    %45 = arith.addf %43, %44 : vector<1x128xf32>
    %46 = math.rsqrt %45 : vector<1x128xf32>
    %47 = vector.broadcast %39 : vector<1x128xf32> to vector<8x128xf32>
    %48 = arith.subf %30, %47 : vector<8x128xf32>
    %49 = vector.broadcast %31 : vector<1x128xf32> to vector<8x128xf32>
    %50 = arith.mulf %49, %48 : vector<8x128xf32>
    %51 = vector.broadcast %46 : vector<1x128xf32> to vector<8x128xf32>
    %52 = arith.mulf %50, %51 : vector<8x128xf32>
    %53 = vector.broadcast %32 : vector<1x128xf32> to vector<8x128xf32>
    %54 = arith.addf %52, %53 : vector<8x128xf32>
    %cst_22 = arith.constant 0.000000e+00 : f32
    %55 = vector.broadcast %cst_22 : f32 to vector<8x128xf32>
    %56 = arith.maximumf %54, %55 : vector<8x128xf32>
    %c0_23 = arith.constant 0 : index
    %c0_24 = arith.constant 0 : index
    %57 = vector.load %arg3[%c0_23, %c0_24] : memref<128x128xf32, #tpu.memory_space<vmem>>, vector<128x128xf32>
    %cst_25 = arith.constant dense<0.000000e+00> : vector<8x128xf32>
    %58 = tpu.matmul %56, %57, %cst_25 {dimension_numbers = #tpu.dot_dimension_numbers<[1], [0], [0], [1], [0, 0, 1, 1], [], []>} : vector<8x128xf32>, vector<128x128xf32>, vector<8x128xf32> -> vector<8x128xf32>
    %c4 = arith.constant 4 : index
    %c0_26 = arith.constant 0 : index
    %59 = vector.load %arg4[%c4, %c0_26] : memref<8x128xf32, #tpu.memory_space<vmem>>, vector<1x128xf32>
    %60 = vector.broadcast %59 : vector<1x128xf32> to vector<8x128xf32>
    %61 = arith.addf %58, %60 : vector<8x128xf32>
    %c0_27 = arith.constant 0 : index
    %c0_28 = arith.constant 0 : index
    %62 = vector.load %arg5[%c0_27, %c0_28] : memref<8x128xf32, #tpu.memory_space<vmem>>, vector<8x128xf32>
    tpu.vector_store %arg5[%c0_27, %c0_28], %61 {strides = array<i32>} : memref<8x128xf32, #tpu.memory_space<vmem>>, vector<8x128xf32>,
    return
  }
}

</mosaic_0001>

<bundles_post_ra>
// kernel: tpu_custom_call.1
= control target key start
LH: loop header
LB: loop body
LE: loop exit
PB: predicated region body
PF: predicated region fallthrough
CT: control target
= control target key end

     0   :  { %10 = vsyncpa [#allocation3], 0  ;;  %s877_s0 = inlined_call_operand.hbm [shape: f32[8,40], index: 0, kind: input, shape index: {}]   ;;  %s878_s1 = inlined_call_operand.hbm [shape: f32[40,128], index: 1, kind: input, shape index: {}]   ;;  %s879_s2 = inlined_call_operand.hbm [shape: f32[128,128], index: 2, kind: input, shape index: {}]   ;;  %s880_s3 = inlined_call_operand.hbm [shape: f32[128,128], index: 3, kind: input, shape index: {}]   ;;  %s881_s4 = inlined_call_operand.vmem [shape: f32[8,128], index: 4, kind: input, shape index: {}]   ;;  %s882_s5 = inlined_call_operand.hbm [shape: f32[8,128], index: 5, kind: output, shape index: {}]  }
   0x1   :  { %11 = vsyncpa [#allocation6], 0 }
   0x2   :  { %12 = vsyncpa [#allocation9], 0 }
   0x3   :  { %13 = vsyncpa [#allocation4], 0  ;;  %s732_s18 = smov [#allocation5]   ;;  %s614_s22 = scalar_lea.hbm %s878_s1, 640 }
   0x4   :  { %s29_s19 = sshll.u32 %s732_s18, 4  ;;  %p615_p0 = scmp.ne.s32.totalorder %s878_s1, %s614_s22  ;;  %s30_s19 = int_to_ptr.vmem [resolvable:$true] %s29_s19 }
   0x5   :  { %p618_p1 = scmp.lt.u32.totalorder %s614_s22, %s878_s1 }
   0x7   :  { %p620_p2 = pnand %p618_p1, %p615_p0 }
   0x9   :  { %623 = shalt.err (!%p620_p2)
}
   0xa   :  { %s624_s27 = scalar_lea.vmem %s30_s19, 640  ;;  %p629_p4 = scmp.lt.s32.totalorder %s30_s19, %s30_s19 }
   0xb   :  { %p625_p3 = scmp.ne.s32.totalorder %s30_s19, %s624_s27  ;;  %p630_p5 = scmp.lt.s32.totalorder %s624_s27, %s624_s27 }
   0xd   :  { %p631_p6 = por %p630_p5, %p629_p4 }
   0xf   :  { %p632_p7 = pnand %p631_p6, %p625_p3 }
  0x11   :  { %635 = shalt.err (!%p632_p7)
}
  0x12   :  { %s733_s28 = smov 128   ;;  %s734_s29 = smov 8  }
  0x13   :  { %35 = dma.hbm_to_vmem [thread:$0]  %s878_s1, 640, %s30_s19, [#allocation6], %s733_s28, %s733_s28, %s734_s29  }
  0x14   :  { %s735_s7 = smov [#allocation2]   ;;  %s736_s9 = smov [#allocation7]  }
  0x15   :  { %s20_s8 = sshll.u32 %s735_s7, 4  ;;  %s41_s10 = sshll.u32 %s736_s9, 4  ;;  %s21_s8 = int_to_ptr.vmem [resolvable:$true] %s20_s8  ;;  %s42_s10 = int_to_ptr.vmem [resolvable:$true] %s41_s10 }
  0x16   :  { %s636_s13 = scalar_lea.hbm %s877_s0, 128 }
  0x17   :  { %p637_p8 = scmp.ne.s32.totalorder %s877_s0, %s636_s13  ;;  %p640_p9 = scmp.lt.u32.totalorder %s636_s13, %s877_s0 }
  0x19   :  { %p642_p10 = pnand %p640_p9, %p637_p8 }
  0x1b   :  { %645 = shalt.err (!%p642_p10)
}
  0x1c   :  { %s646_s1 = scalar_lea.vmem %s21_s8, 128  ;;  %p651_p12 = scmp.lt.s32.totalorder %s21_s8, %s21_s8 }
  0x1d   :  { %p647_p11 = scmp.ne.s32.totalorder %s21_s8, %s646_s1  ;;  %p652_p13 = scmp.lt.s32.totalorder %s646_s1, %s646_s1 }
  0x1f   :  { %p653_p0 = por %p652_p13, %p651_p12 }
  0x21   :  { %p654_p1 = pnand %p653_p0, %p647_p11 }
  0x23   :  { %657 = shalt.err (!%p654_p1)
}
  0x24   :  { %23 = dma.hbm_to_vmem [thread:$0]  %s877_s0, 128, %s21_s8, [#allocation3]  }
  0x25   :  { %s658_s22 = scalar_lea.hbm %s879_s2, 2048 }
  0x26   :  { %p659_p2 = scmp.ne.s32.totalorder %s879_s2, %s658_s22  ;;  %p662_p3 = scmp.lt.u32.totalorder %s658_s22, %s879_s2 }
  0x28   :  { %p664_p4 = pnand %p662_p3, %p659_p2 }
  0x2a   :  { %667 = shalt.err (!%p664_p4)
}
  0x2b   :  { %s668_s27 = scalar_lea.vmem %s42_s10, 2048  ;;  %p673_p6 = scmp.lt.s32.totalorder %s42_s10, %s42_s10 }
  0x2c   :  { %p669_p5 = scmp.ne.s32.totalorder %s42_s10, %s668_s27  ;;  %p674_p7 = scmp.lt.s32.totalorder %s668_s27, %s668_s27 }
  0x2e   :  { %p675_p8 = por %p674_p7, %p673_p6 }
  0x30   :  { %p676_p9 = pnand %p675_p8, %p669_p5 }
  0x32   :  { %679 = shalt.err (!%p676_p9)
}
  0x33   :  { %47 = dma.hbm_to_vmem [thread:$0]  %s879_s2, 2048, %s42_s10, [#allocation6], %s733_s28, %s733_s28, %s734_s29  }
  0x34   :  { %s737_s6 = smov [#allocation8]   ;;  %s680_s11 = scalar_lea.hbm %s880_s3, 2048 }
  0x35   :  { %s53_s7 = sshll.u32 %s737_s6, 4  ;;  %p681_p10 = scmp.ne.s32.totalorder %s880_s3, %s680_s11  ;;  %s54_s7 = int_to_ptr.vmem [resolvable:$true] %s53_s7 }
  0x36   :  { %p684_p11 = scmp.lt.u32.totalorder %s680_s11, %s880_s3 }
  0x38   :  { %p686_p12 = pnand %p684_p11, %p681_p10 }
  0x3a   :  { %689 = shalt.err (!%p686_p12)
}
  0x3b   :  { %s690_s16 = scalar_lea.vmem %s54_s7, 2048  ;;  %p695_p0 = scmp.lt.s32.totalorder %s54_s7, %s54_s7 }
  0x3c   :  { %p691_p13 = scmp.ne.s32.totalorder %s54_s7, %s690_s16  ;;  %p696_p1 = scmp.lt.s32.totalorder %s690_s16, %s690_s16 }
  0x3e   :  { %p697_p2 = por %p696_p1, %p695_p0 }
  0x40   :  { %p698_p3 = pnand %p697_p2, %p691_p13 }
  0x42   :  { %701 = shalt.err (!%p698_p3)
}
  0x43   :  { %59 = dma.hbm_to_vmem [thread:$0]  %s880_s3, 2048, %s54_s7, [#allocation9], %s733_s28, %s733_s28, %s734_s29  }
  0x44   :  { %724 = dma.done.wait [#allocation3], 128  }
  0x45   :  { %725 = vsyncadd [#allocation3], 4294967168 }
  0x46   :  { %726 = dma.done.wait [#allocation6], 2688  }
  0x47   :  { %727 = vsyncadd [#allocation6], 4294964608 }
  0x48   :  { %728 = dma.done.wait [#allocation9], 2048  }
  0x49   :  { %729 = vsyncadd [#allocation9], 4294965248  ;;  %v738_v0 = vmov 0.0|0.0   ;;  %vm739_vm0 = vmmov 0   ;;  %v740_v1 = vmov 0.0   ;;  %v75_v2 = vld [vmem:[#allocation5] sm:$0xff] }
  0x4a   :  { %546 = vmatprep.subr.bf16.mxu0 %v738_v0  ;;  %473 = vmatprep.mubr.msk.f32.mxu0 %vm739_vm0, %v740_v1  ;;  %v76_v3 = vld [vmem:[#allocation5 + $0x8] sm:$0xff]  ;;  %v77_v4 = vld [vmem:[#allocation5 + $0x10] sm:$0xff]  ;;  %v78_v6 = vld [vmem:[#allocation5 + $0x18] sm:$0xff]  ;;  %vm80_vm1 = vcmask 326656   ;;  %s741_s23 = smov [#allocation10]  }
  0x4b   :  { %552 = vmatprep.subr.bf16.mxu1 %v738_v0  ;;  %508 = vmatprep.mubr.msk.f32.mxu1 %vm739_vm0, %v740_v1  ;;  %v547_v5 = vpack.c.bf16 %v76_v3, %v75_v2  ;;  %v550_v7 = vpack.c.bf16 %v78_v6, %v77_v4  ;;  %v79_v8 = vld [vmem:[#allocation5 + $0x20] sm:$0xff]  ;;  %v74_v9 = vld [vmem:[#allocation2] sm:$0xff]  ;;  %v188_v10 = vld [vmem:[#allocation7] sm:$0xff]  ;;  %s406_s24 = sshll.u32 %s741_s23, 4  ;;  %s407_s24 = int_to_ptr.vmem [resolvable:$true] %s406_s24 }
  0x4c   :  { %v189_v11 = vld [vmem:[#allocation7 + $0x8] sm:$0xff]  ;;  %v190_v13 = vld [vmem:[#allocation7 + $0x10] sm:$0xff]  ;;  %v191_v14 = vld [vmem:[#allocation7 + $0x18] sm:$0xff]  ;;  %s702_s25 = scalar_lea.vmem %s407_s24, 128  ;;  %p707_p5 = scmp.lt.s32.totalorder %s407_s24, %s407_s24 }
  0x4d   :  { %548 = vmatpush3.bf16.msra.mxu0 %v547_v5  ;;  %v553_v12 = vpack.c.bf16 %v189_v11, %v188_v10  ;;  %v556_v15 = vpack.c.bf16 %v191_v14, %v190_v13  ;;  %v192_v16 = vld [vmem:[#allocation7 + $0x20] sm:$0xff]  ;;  %v193_v17 = vld [vmem:[#allocation7 + $0x28] sm:$0xff]  ;;  %v194_v19 = vld [vmem:[#allocation7 + $0x30] sm:$0xff]  ;;  %p703_p4 = scmp.ne.s32.totalorder %s407_s24, %s702_s25  ;;  %p708_p6 = scmp.lt.s32.totalorder %s702_s25, %s702_s25 }
  0x4e   :  { %549 = vmatprep.subr.bf16.mxu0 %v738_v0  ;;  %v559_v18 = vpack.c.bf16 %v193_v17, %v192_v16  ;;  %v195_v20 = vld [vmem:[#allocation7 + $0x38] sm:$0xff]  ;;  %v196_v22 = vld [vmem:[#allocation7 + $0x40] sm:$0xff]  ;;  %v197_v23 = vld [vmem:[#allocation7 + $0x48] sm:$0xff] }
  0x4f   :  { %554 = vmatpush3.bf16.msra.mxu1 %v553_v12  ;;  %v562_v21 = vpack.c.bf16 %v195_v20, %v194_v19  ;;  %v565_v24 = vpack.c.bf16 %v197_v23, %v196_v22  ;;  %v198_v25 = vld [vmem:[#allocation7 + $0x50] sm:$0xff]  ;;  %v199_v26 = vld [vmem:[#allocation7 + $0x58] sm:$0xff]  ;;  %v200_v28 = vld [vmem:[#allocation7 + $0x60] sm:$0xff]  ;;  %p709_p7 = por %p708_p6, %p707_p5 }
  0x50   :  { %555 = vmatprep.subr.bf16.mxu1 %v738_v0  ;;  %v568_v27 = vpack.c.bf16 %v199_v26, %v198_v25  ;;  %v201_v29 = vld [vmem:[#allocation7 + $0x68] sm:$0xff]  ;;  %v202_v31 = vld [vmem:[#allocation7 + $0x70] sm:$0xff]  ;;  %v203_v32 = vld [vmem:[#allocation7 + $0x78] sm:$0xff] }
  0x51   :  { %551 = vmatpush3.bf16.msra.mxu0 %v550_v7  ;;  %v571_v30 = vpack.c.bf16 %v201_v29, %v200_v28  ;;  %v574_v33 = vpack.c.bf16 %v203_v32, %v202_v31  ;;  %v418_v55 = vld [vmem:[%s881_s4] ss:$0 sm:$0xff]  ;;  %v419_v58 = vld [vmem:[%s881_s4 + $0x1] ss:$0 sm:$0xff]  ;;  %v308_v62 = vld [vmem:[#allocation8] sm:$0xff]  ;;  %p710_p8 = pnand %p709_p7, %p703_p4 }
  0x52   :  { %471 = vmatprep.subr.mxu0 %v740_v1  ;;  %v309_v63 = vld [vmem:[#allocation8 + $0x8] sm:$0xff]  ;;  %v310_v2 = vld [vmem:[#allocation8 + $0x10] sm:$0xff]  ;;  %v311_v3 = vld [vmem:[#allocation8 + $0x18] sm:$0xff] }
  0x53   :  { %557 = vmatpush3.bf16.msra.mxu1 %v556_v15  ;;  %v580_v4 = vpack.c.bf16 %v311_v3, %v310_v2  ;;  %v312_v5 = vld [vmem:[#allocation8 + $0x20] sm:$0xff]  ;;  %v313_v6 = vld [vmem:[#allocation8 + $0x28] sm:$0xff]  ;;  %v318_v14 = vld [vmem:[#allocation8 + $0x50] sm:$0xff] }
  0x54   :  { %558 = vmatprep.subr.bf16.mxu1 %v738_v0  ;;  %v583_v7 = vpack.c.bf16 %v313_v6, %v312_v5  ;;  %v316_v11 = vld [vmem:[#allocation8 + $0x40] sm:$0xff]  ;;  %v317_v12 = vld [vmem:[#allocation8 + $0x48] sm:$0xff]  ;;  %v319_v15 = vld [vmem:[#allocation8 + $0x58] sm:$0xff] }
  0x55   :  { %472 = vmatpush3.msra.mxu0 %v79_v8  ;;  %v314_v8 = vld [vmem:[#allocation8 + $0x30] sm:$0xff]  ;;  %v589_v13 = vpack.c.bf16 %v317_v12, %v316_v11  ;;  %v592_v16 = vpack.c.bf16 %v319_v15, %v318_v14  ;;  %v320_v17 = vld [vmem:[#allocation8 + $0x60] sm:$0xff] }
  0x56   :  { %474 = vmatmul.mubr.msk.f32.vlgmr.msra.gmra.mrb[0].mxu0 %vm80_vm1, %v74_v9  ;;  %576 = vmatprep.subr.bf16.mxu0 %v738_v0  ;;  %v315_v9 = vld [vmem:[#allocation8 + $0x38] sm:$0xff]  ;;  %v322_v20 = vld [vmem:[#allocation8 + $0x70] sm:$0xff] }
  0x57   :  { %543 = vmatprep.mubr.msk.f32.mxu0 %vm739_vm0, %v740_v1  ;;  %560 = vmatpush3.bf16.msra.mxu1 %v559_v18  ;;  %v577_v1 = vpack.c.bf16 %v309_v63, %v308_v62  ;;  %v586_v10 = vpack.c.bf16 %v315_v9, %v314_v8  ;;  %v321_v18 = vld [vmem:[#allocation8 + $0x68] sm:$0xff] }
  0x58   :  { %561 = vmatprep.subr.bf16.mxu1 %v738_v0  ;;  %v595_v19 = vpack.c.bf16 %v321_v18, %v320_v17 }
  0x59   :  { %578 = vmatpush3.bf16.msra.mxu0 %v577_v1 }
  0x5a   :  { %579 = vmatprep.subr.bf16.mxu0 %v738_v0 }
  0x5b   :  { %563 = vmatpush3.bf16.msra.mxu1 %v562_v21  ;;  %v323_v21 = vld [vmem:[#allocation8 + $0x78] sm:$0xff] }
  0x5c   :  { %564 = vmatprep.subr.bf16.mxu1 %v738_v0  ;;  %v598_v22 = vpack.c.bf16 %v323_v21, %v322_v20 }
  0x5d   :  { %581 = vmatpush3.bf16.msra.mxu0 %v580_v4 }
  0x5e   :  { %582 = vmatprep.subr.bf16.mxu0 %v738_v0 }
  0x5f   :  { %566 = vmatpush3.bf16.msra.mxu1 %v565_v24 }
  0x60   :  { %567 = vmatprep.subr.bf16.mxu1 %v738_v0 }
  0x61   :  { %584 = vmatpush3.bf16.msra.mxu0 %v583_v7 }
  0x62   :  { %585 = vmatprep.subr.bf16.mxu0 %v738_v0 }
  0x63   :  { %569 = vmatpush3.bf16.msra.mxu1 %v568_v27 }
  0x64   :  { %570 = vmatprep.subr.bf16.mxu1 %v738_v0 }
  0x65   :  { %587 = vmatpush3.bf16.msra.mxu0 %v586_v10 }
  0x66   :  { %588 = vmatprep.subr.bf16.mxu0 %v738_v0 }
  0x67   :  { %572 = vmatpush3.bf16.msra.mxu1 %v571_v30 }
  0x68   :  { %573 = vmatprep.subr.bf16.mxu1 %v738_v0 }
  0x69   :  { %590 = vmatpush3.bf16.msra.mxu0 %v589_v13 }
  0x6a   :  { %591 = vmatprep.subr.bf16.mxu0 %v738_v0 }
  0x6b   :  { %575 = vmatpush3.bf16.msra.mxu1 %v574_v33 }
  0x6d   :  { %593 = vmatpush3.bf16.msra.mxu0 %v592_v16 }
  0x6e   :  { %594 = vmatprep.subr.bf16.mxu0 %v738_v0 }
  0x71   :  { %596 = vmatpush3.bf16.msra.mxu0 %v595_v19 }
  0x72   :  { %597 = vmatprep.subr.bf16.mxu0 %v738_v0 }
  0x75   :  { %599 = vmatpush3.bf16.msra.mxu0 %v598_v22 }
 0x129   :  { %v150_v34 = vpop.f32.mrb[0].mxu0 }
 0x12a   :  { %v156_v35 = vrot.slane %v150_v34, 4  ;;  %v162_v36 = vmul.f32 %v150_v34, %v150_v34  ;;  %v475_v37 = vpop.f32.mrb[1].mxu0 }
 0x12c   :  { %v157_v38 = vadd.f32 %v156_v35, %v150_v34  ;;  %v163_v39 = vrot.slane %v162_v36, 4 }
 0x12e   :  { %v158_v40 = vrot.slane %v157_v38, 2  ;;  %v164_v41 = vadd.f32 %v163_v39, %v162_v36 }
 0x130   :  { %v159_v42 = vadd.f32 %v158_v40, %v157_v38  ;;  %v165_v43 = vrot.slane %v164_v41, 2 }
 0x132   :  { %v160_v44 = vrot.slane %v159_v42, 1  ;;  %v166_v45 = vadd.f32 %v165_v43, %v164_v41  ;;  %v420_v43 = vld [vmem:[%s881_s4 + $0x2] ss:$0 sm:$0xff] }
 0x134   :  { %v161_v46 = vadd.f32 %v160_v44, %v159_v42  ;;  %v167_v47 = vrot.slane %v166_v45, 1 }
 0x136   :  { %v168_v48 = vadd.f32 %v167_v47, %v166_v45  ;;  %v169_v49 = vmul.f32 0.125, %v161_v46  ;;  %v421_v46 = vld [vmem:[%s881_s4 + $0x3] ss:$0 sm:$0xff] }
 0x138   :  { %v170_v50 = vmul.f32 0.125, %v168_v48  ;;  %v171_v51 = vmul.f32 %v169_v49, %v169_v49  ;;  %v175_v54 = vsub.f32 %v150_v34, %v169_v49 }
 0x13a   :  { %v172_v52 = vsub.f32 %v170_v50, %v171_v51  ;;  %v180_v56 = vmul.f32 %v418_v55, %v175_v54  ;;  %v422_v50 = vld [vmem:[%s881_s4 + $0x4] ss:$0 sm:$0xff] }
 0x13c   :  { %v173_v53 = vadd.f32 1e-05, %v172_v52 }
 0x13e   :  { %610 = vrsqrt.f32 %v173_v53 }
 0x148   :  { %v611_v57 = vpop.eup %610 }
 0x149   :  { %v181_v59 = vmul.f32 %v611_v57, %v180_v56 }
 0x14b   :  { %v186_v60 = vadd.f32 %v419_v58, %v181_v59 }
 0x14d   :  { %v187_v61 = vmax.f32 %v186_v60, 0.0 }
 0x14f   :  { %509 = vmatmul.mubr.f32.vlgmr.msra.gmra.mrb[0].mxu1 %v187_v61 }
 0x222   :  { %v270_v23 = vpop.f32.mrb[0].mxu1 }
 0x223   :  { %v276_v24 = vrot.slane %v270_v23, 4  ;;  %v282_v25 = vmul.f32 %v270_v23, %v270_v23  ;;  %v510_v26 = vpop.f32.mrb[1].mxu1 }
 0x225   :  { %v277_v27 = vadd.f32 %v276_v24, %v270_v23  ;;  %v283_v28 = vrot.slane %v282_v25, 4 }
 0x227   :  { %v278_v29 = vrot.slane %v277_v27, 2  ;;  %v284_v30 = vadd.f32 %v283_v28, %v282_v25 }
 0x229   :  { %v279_v31 = vadd.f32 %v278_v29, %v277_v27  ;;  %v285_v32 = vrot.slane %v284_v30, 2 }
 0x22b   :  { %v280_v33 = vrot.slane %v279_v31, 1  ;;  %v286_v34 = vadd.f32 %v285_v32, %v284_v30 }
 0x22d   :  { %v281_v35 = vadd.f32 %v280_v33, %v279_v31  ;;  %v287_v36 = vrot.slane %v286_v34, 1 }
 0x22f   :  { %v288_v37 = vadd.f32 %v287_v36, %v286_v34  ;;  %v289_v0 = vmul.f32 0.125, %v281_v35 }
 0x231   :  { %v290_v38 = vmul.f32 0.125, %v288_v37  ;;  %v291_v39 = vmul.f32 %v289_v0, %v289_v0  ;;  %v295_v42 = vsub.f32 %v270_v23, %v289_v0 }
 0x233   :  { %v292_v40 = vsub.f32 %v290_v38, %v291_v39  ;;  %v300_v44 = vmul.f32 %v420_v43, %v295_v42 }
 0x235   :  { %v293_v41 = vadd.f32 1e-05, %v292_v40 }
 0x237   :  { %612 = vrsqrt.f32 %v293_v41 }
 0x241   :  { %v613_v45 = vpop.eup %612 }
 0x242   :  { %v301_v47 = vmul.f32 %v613_v45, %v300_v44 }
 0x244   :  { %v306_v48 = vadd.f32 %v421_v46, %v301_v47 }
 0x246   :  { %v307_v49 = vmax.f32 %v306_v48, 0.0 }
 0x248   :  { %544 = vmatmul.mubr.f32.vlgmr.msra.gmra.mrb[2].mxu0 %v307_v49 }
 0x31b   :  { %v395_v51 = vpop.f32.mrb[2].mxu0 }
 0x31c   :  { %v396_v52 = vadd.f32 %v422_v50, %v395_v51  ;;  %v545_v53 = vpop.f32.mrb[3].mxu0 }
 0x31e   :  { %399 = vst [vmem:[#allocation10] sm:$0xff] %v396_v52 }
 0x31f   :  { %713 = shalt.err (!%p710_p8)
}
 0x320   :  { %s714_s0 = scalar_lea.hbm %s882_s5, 128 }
 0x321   :  { %p715_p9 = scmp.ne.s32.totalorder %s882_s5, %s714_s0  ;;  %p718_p10 = scmp.lt.u32.totalorder %s714_s0, %s882_s5 }
 0x323   :  { %p720_p11 = pnand %p718_p10, %p715_p9 }
 0x325   :  { %723 = shalt.err (!%p720_p11)
}
 0x326   :  { %409 = dma.vmem_to_hbm [thread:$0]  %s407_s24, 128, %s882_s5, [#allocation4]  }
 0x327   :  { %730 = dma.done.wait [#allocation4], 128  }
 0x328   :  { %731 = vsyncadd [#allocation4], 4294967168 }
 0x329   :  { %413 = vsyncpa [#allocation3], 1 }
 0x32a   :  { %414 = vsyncpa [#allocation6], 1 }
 0x32b   :  { %415 = vsyncpa [#allocation9], 1 }
 0x32c   :  { %416 = vsyncpa [#allocation4], 1 }

</bundles_post_ra>
